<compile_context>
chip_gen: v5e
topology: v5e:2x2
jax: 0.10.0
libtpu: 0.0.40
codegen_flags: <defaults>
</compile_context>

<pallas_src>
import functools

import jax
import jax.numpy as jnp
import numpy as np
from jax import lax
from jax.experimental import pallas as pl
from jax.experimental.pallas import tpu as pltpu


def _round_up(x, m):
    return (x + m - 1) // m * m


def _vmem_plan():
    """Generation-aware VMEM sizing: v5e/v6e have 128 MiB physical VMEM, v7x only 64 MiB."""
    try:
        cap = int(pltpu.get_tpu_info().vmem_capacity_bytes)
    except Exception:
        cap = 64 * 1024 * 1024  # conservative fallback (v7x-sized)
    if cap >= 96 * 1024 * 1024:  # v5e / v6e
        return {"budget": 64 << 20, "limit": 96 << 20, "tm_max": 2048}
    return {"budget": 24 << 20, "limit": 48 << 20, "tm_max": 1024}  # v7x


# ------------------------------------------------------------------
# Kernel 1: embed()  --  projection + L2 normalize (p=2, dim=-1)
# Used standalone by the predict() path.  Inputs bf16 (cast in wrapper), MXU accumulates
# in f32, normalization math stays f32, cast to out_dtype (bf16) only on the store.
# ------------------------------------------------------------------
def _embed_kernel(h_ref, w_ref, o_ref):
    y = jnp.dot(h_ref[...], w_ref[...], preferred_element_type=jnp.float32)  # [TM, D] f32
    # F.normalize: x / max(||x||, 1e-12)  ==  x * rsqrt(max(sumsq, 1e-24))
    inv = lax.rsqrt(jnp.maximum(jnp.sum(y * y, axis=-1, keepdims=True), 1e-24))
    o_ref[...] = (y * inv).astype(o_ref.dtype)


def embed(hidden, weight, *, tm=None, out_dtype=jnp.bfloat16):
    """hidden: [..., H] encoder last_hidden_state, weight: [H, D]. Returns [..., D] out_dtype."""
    orig_shape = hidden.shape
    H = orig_shape[-1]
    D = weight.shape[1]
    flat = hidden.reshape(-1, H).astype(jnp.bfloat16)
    w = weight.astype(jnp.bfloat16)
    M = flat.shape[0]

    plan = _vmem_plan()
    out_bytes = jnp.dtype(out_dtype).itemsize
    # 2x-buffered input + output blocks; weight held resident (count its 2 buffers).
    budget = plan["budget"] - 2 * H * D * 2
    per_row = 2 * (H * 2) + 2 * (D * out_bytes)
    tm_cap = max(8, (budget // per_row) // 8 * 8)
    if tm is None:
        tm = min(plan["tm_max"], tm_cap)
    else:
        tm = min(max(8, _round_up(tm, 8)), tm_cap)   # caller tm can't blow past the VMEM budget
    tm = min(tm, _round_up(M, 8))                    # don't over-pad tiny inputs

    Mp = pl.cdiv(M, tm) * tm
    if Mp != M:
        flat = jnp.pad(flat, ((0, Mp - M), (0, 0)))  # zero rows normalize to zero rows

    out = pl.pallas_call(
        _embed_kernel,
        out_shape=jax.ShapeDtypeStruct((Mp, D), out_dtype),
        grid_spec=pltpu.PrefetchScalarGridSpec(
            num_scalar_prefetch=0,
            grid=(Mp // tm,),
            in_specs=[
                pl.BlockSpec((tm, H), lambda i: (i, 0)),
                pl.BlockSpec((H, D), lambda i: (0, 0)),   # resident weight block
            ],
            out_specs=pl.BlockSpec((tm, D), lambda i: (i, 0)),
        ),
        compiler_params=pltpu.CompilerParams(
            dimension_semantics=("parallel",),
            vmem_limit_bytes=plan["limit"]),
    )(flat, w)
    return out[:M].reshape(orig_shape[:-1] + (D,))


# ------------------------------------------------------------------
# Kernel 2: fused forward  --  project + normalize + score + hinge, one batch-block per step.
# Row layout per example (built in the wrapper): [ text (Lt_pad rows) | et (Le*E_pad rows) ]
# with et row index = l*E_pad + e, so both the single projection matmul and the
# max-over-Le running maximum operate on sublane-aligned (multiple-of-8) row slices.
# ------------------------------------------------------------------
def _fused_loss_kernel(rows_ref, w_ref, loss_ref, *,
                       bt, rows_per_ex, lt_pad, e_pad, num_et, num_pos, et_len, margin):
    # ONE projection matmul for all text + event-type rows of every example in this block.
    y = jnp.dot(rows_ref[...], w_ref[...], preferred_element_type=jnp.float32)  # [bt*R, D] f32
    y = y * lax.rsqrt(jnp.maximum(jnp.sum(y * y, axis=-1, keepdims=True), 1e-24))
    y_b = y.astype(jnp.bfloat16)                           # single cast; MXU feed for the sim

    idx = lax.broadcasted_iota(jnp.int32, (e_pad, 1), 0)
    pos_mask = idx < num_pos
    neg_mask = jnp.logical_and(idx >= num_pos, idx < num_et)

    for i in range(bt):                                    # short static loop, fully unrolled
        base = i * rows_per_ex
        t = y_b[base:base + lt_pad, :]                     # [Lt_pad, D]   aligned view
        e = y_b[base + lt_pad:base + rows_per_ex, :]       # [Le*E_pad, D] aligned view
        # sim[l*E_pad + e, t] = <et_{e,l}, text_t>, f32 accumulation on the MXU
        sim = lax.dot_general(e, t, (((1,), (1,)), ((), ())),
                              preferred_element_type=jnp.float32)   # [Le*E_pad, Lt_pad]
        # max over the Le prompt tokens: running max over sublane-aligned [E_pad, Lt] slices
        best = sim[0:e_pad, :]
        for l in range(1, et_len):
            best = jnp.maximum(best, sim[l * e_pad:(l + 1) * e_pad, :])
        scores = jnp.sum(best, axis=1, keepdims=True)                # [E_pad, 1]
        max_neg = jnp.max(jnp.where(neg_mask, scores, -1e30))        # pad / pos rows excluded
        hinge = jnp.maximum(0.0, margin - scores + max_neg)
        loss_i = jnp.sum(jnp.where(pos_mask, hinge, 0.0)) * (1.0 / num_pos)
        # lane-dense per-example partial loss; padded examples discarded in JAX
        loss_ref[pl.ds(i, 1), :, :] = jnp.broadcast_to(loss_i, (1, 1, 128)).astype(jnp.float32)


def etr_forward_pallas(text_hidden, et_hidden, weight, *, num_pos, margin, num_blocks=None):
    """text_hidden: [B, Lt, H], et_hidden: [B, E, Le, H] (E = pos + neg), weight: [H, D]."""
    B, Lt, H = text_hidden.shape
    _, E, Le, _ = et_hidden.shape
    D = weight.shape[1]

    if num_blocks is None:
        # 2 parallel blocks keep both v7x TensorCores busy; the extra grid step is ~free on
        # single-TC v5e/v6e.
        num_blocks = 2 if B >= 2 else 1
    bt = pl.cdiv(B, num_blocks)
    B_pad = num_blocks * bt

    Lt_pad = _round_up(Lt, 8)       # zero text rows normalize to 0 and add 0 to every score
    E_pad = _round_up(E, 8)         # pad events are masked out of pos / neg scoring
    R = Lt_pad + Le * E_pad         # rows per example (multiple of 8 -> aligned slices)

    text_p = text_hidden
    if Lt_pad != Lt:
        text_p = jnp.pad(text_p, ((0, 0), (0, Lt_pad - Lt), (0, 0)))
    et_p = et_hidden
    if E_pad != E:
        et_p = jnp.pad(et_p, ((0, 0), (0, E_pad - E), (0, 0), (0, 0)))
    # [B, E_pad, Le, H] -> [B, Le, E_pad, H] -> [B, Le*E_pad, H]; row index = l*E_pad + e
    et_r = jnp.transpose(et_p, (0, 2, 1, 3)).reshape(B, Le * E_pad, H)

    rows = jnp.concatenate([text_p, et_r], axis=1)        # [B, R, H]
    if B_pad != B:
        rows = jnp.pad(rows, ((0, B_pad - B), (0, 0), (0, 0)))
    rows_flat = rows.reshape(B_pad * R, H).astype(jnp.bfloat16)   # bf16 MXU feed, cast once
    w_b = weight.astype(jnp.bfloat16)

    plan = _vmem_plan()
    kernel = functools.partial(
        _fused_loss_kernel, bt=bt, rows_per_ex=R, lt_pad=Lt_pad, e_pad=E_pad,
        num_et=E, num_pos=num_pos, et_len=Le, margin=float(margin))

    # TODO(synk): pipeline_mode=pl.Buffered(1) on the resident weight spec would drop its
    # second buffer (only matters for large H*D on v7x); skipped here for API stability.
    partial_losses = pl.pallas_call(
        kernel,
        out_shape=jax.ShapeDtypeStruct((B_pad, 1, 128), jnp.float32),
        grid_spec=pltpu.PrefetchScalarGridSpec(
            num_scalar_prefetch=0,
            grid=(num_blocks,),
            in_specs=[
                pl.BlockSpec((bt * R, H), lambda g: (g, 0)),
                pl.BlockSpec((H, D), lambda g: (0, 0)),    # resident weight block
            ],
            out_specs=pl.BlockSpec((bt, 1, 128), lambda g: (g, 0, 0)),
        ),
        compiler_params=pltpu.CompilerParams(
            dimension_semantics=("parallel",),             # blocks independent -> 2 TCs on v7x
            vmem_limit_bytes=plan["limit"]),
    )(rows_flat, w_b)
    return jnp.sum(partial_losses[:B, 0, 0])


# ------------------------------------------------------------------
# Pure-JAX references
# ------------------------------------------------------------------
def etr_forward_ref(text_hidden, et_hidden, weight, *, num_pos, margin, use_bf16=True):
    in_dt = jnp.bfloat16 if use_bf16 else jnp.float32
    H, D = weight.shape
    w = weight.astype(in_dt)

    def emb(h):
        y = jnp.dot(h.reshape(-1, H).astype(in_dt), w, preferred_element_type=jnp.float32)
        y = y * lax.rsqrt(jnp.maximum(jnp.sum(y * y, axis=-1, keepdims=True), 1e-24))
        return y.reshape(h.shape[:-1] + (D,))

    te = emb(text_hidden)   # [B, Lt, D]
    ee = emb(et_hidden)     # [B, E, Le, D]
    if use_bf16:
        te = te.astype(jnp.bfloat16)
        ee = ee.astype(jnp.bfloat16)
    B = text_hidden.shape[0]
    total = jnp.float32(0.0)
    for b in range(B):
        sim = jnp.einsum('td,eld->etl', te[b], ee[b],
                         preferred_element_type=jnp.float32)           # [E, Lt, Le]
        scores = jnp.max(sim, axis=2).sum(axis=1)                      # [E]
        pos = scores[:num_pos]
        neg = scores[num_pos:]
        total = total + jnp.mean(jnp.maximum(0.0, margin - pos + jnp.max(neg)))
    return total


def embed_ref(hidden, weight, out_dtype=jnp.bfloat16):
    H, D = weight.shape
    y = jnp.dot(hidden.reshape(-1, H).astype(jnp.bfloat16), weight.astype(jnp.bfloat16),
                preferred_element_type=jnp.float32)
    y = y * lax.rsqrt(jnp.maximum(jnp.sum(y * y, axis=-1, keepdims=True), 1e-24))
    return y.astype(out_dtype).reshape(hidden.shape[:-1] + (D,))


if __name__ == "__main__":
    # Small shapes consistent with the module's forward():
    B = 2          # batch size
    Lt = 16        # tokenized sentence length
    Le = 8         # tokenized event-type prompt length
    H = 64         # base_config.hidden_size
    D = 128        # config.etr_linear_hidden_num (multiple of 128 -> lane-dense)
    P = 2          # config.etr_max_pos
    N = 3          # config.etr_max_neg
    E = P + N
    MARGIN = 1.0   # config.etr_margin

    key = jax.random.PRNGKey(0)
    k1, k2, k3 = jax.random.split(key, 3)
    # Synthetic encoder outputs (stand-ins for BertModel last_hidden_state).
    text_hidden = jax.random.normal(k1, (B, Lt, H), dtype=jnp.float32)
    et_hidden = jax.random.normal(k2, (B, E, Le, H), dtype=jnp.float32)
    # nn.Linear(H, D, bias=False) weight, stored transposed as [H, D].
    weight = jax.random.normal(k3, (H, D), dtype=jnp.float32) * (1.0 / np.sqrt(H))

    # Fused forward (projection + normalize + scoring + hinge loss)
    loss = jax.block_until_ready(
        etr_forward_pallas(text_hidden, et_hidden, weight, num_pos=P, margin=MARGIN))

    ref_matched = jax.block_until_ready(
        etr_forward_ref(text_hidden, et_hidden, weight, num_pos=P, margin=MARGIN, use_bf16=True))
    ref_f32 = jax.block_until_ready(
        etr_forward_ref(text_hidden, et_hidden, weight, num_pos=P, margin=MARGIN, use_bf16=False))

    assert np.allclose(np.asarray(loss), np.asarray(ref_matched), rtol=3e-3, atol=3e-3), \
        f"mismatch vs bf16-matched ref: pallas={float(loss)} ref={float(ref_matched)}"
    assert np.allclose(np.asarray(loss), np.asarray(ref_f32), rtol=5e-2, atol=5e-2), \
        f"mismatch vs f32 ref: pallas={float(loss)} ref={float(ref_f32)}"

    # Standalone embed() kernel (predict() path) sanity check (bf16 output)
    emb_out = jax.block_until_ready(embed(text_hidden, weight))
    emb_exp = jax.block_until_ready(embed_ref(text_hidden, weight))
    assert np.allclose(np.asarray(emb_out.astype(jnp.float32)),
                       np.asarray(emb_exp.astype(jnp.float32)),
                       rtol=2e-2, atol=2e-2), "embed() mismatch vs reference"

    print("KERNEL_OK")
</pallas_src>

<mosaic_0001>
module attributes {stable_mosaic.version = 11 : i64} {
  func.func @_fused_loss_kernel(%arg0: i32, %arg1: memref<80x64xbf16, #tpu.memory_space<vmem>>, %arg2: memref<64x128xbf16, #tpu.memory_space<vmem>>, %arg3: memref<1x1x128xf32, #tpu.memory_space<vmem>>) attributes {dimension_semantics = [#tpu.dimension_semantics<parallel>], iteration_bounds = array<i64: 2>, scalar_prefetch = 0 : i64, scratch_operands = 0 : i64, tpu.core_type = #tpu.core_type<tc>, window_params = [{transform_indices = @transform_0, window_bounds = array<i64: 80, 64>}, {pipeline_mode = #tpu.pipeline_mode<synchronous>, transform_indices = @transform_1, window_bounds = array<i64: 64, 128>}, {transform_indices = @transform_2, window_bounds = array<i64: 1, 1, 128>}]} {
    %c0 = arith.constant 0 : index
    %c0_0 = arith.constant 0 : index
    %0 = vector.load %arg1[%c0, %c0_0] : memref<80x64xbf16, #tpu.memory_space<vmem>>, vector<80x64xbf16>
    %c0_1 = arith.constant 0 : index
    %c0_2 = arith.constant 0 : index
    %1 = vector.load %arg2[%c0_1, %c0_2] : memref<64x128xbf16, #tpu.memory_space<vmem>>, vector<64x128xbf16>
    %cst = arith.constant dense<0.000000e+00> : vector<80x128xf32>
    %2 = tpu.matmul %0, %1, %cst {dimension_numbers = #tpu.dot_dimension_numbers<[1], [0], [0], [1], [0, 0, 1, 1], [], []>} : vector<80x64xbf16>, vector<64x128xbf16>, vector<80x128xf32> -> vector<80x128xf32>
    %3 = arith.mulf %2, %2 : vector<80x128xf32>
    %cst_3 = arith.constant dense<0.000000e+00> : vector<80xf32>
    %4 = vector.multi_reduction <add>, %3, %cst_3 [1] : vector<80x128xf32> to vector<80xf32>
    %5 = vector.shape_cast %4 : vector<80xf32> to vector<80x1xf32>
    %cst_4 = arith.constant 1.000000e-24 : f32
    %6 = vector.broadcast %cst_4 : f32 to vector<80x1xf32>
    %7 = arith.maximumf %5, %6 : vector<80x1xf32>
    %8 = math.rsqrt %7 : vector<80x1xf32>
    %9 = vector.broadcast %8 : vector<80x1xf32> to vector<80x128xf32>
    %10 = arith.mulf %2, %9 : vector<80x128xf32>
    %11 = arith.truncf %10 : vector<80x128xf32> to vector<80x128xbf16>
    %12 = tpu.iota {dimensions = array<i32: 0>} : vector<8x1xi32>
    %c2_i32 = arith.constant 2 : i32
    %13 = vector.broadcast %c2_i32 : i32 to vector<8x1xi32>
    %14 = arith.cmpi slt, %12, %13 : vector<8x1xi32>
    %c2_i32_5 = arith.constant 2 : i32
    %15 = vector.broadcast %c2_i32_5 : i32 to vector<8x1xi32>
    %16 = arith.cmpi sge, %12, %15 : vector<8x1xi32>
    %c5_i32 = arith.constant 5 : i32
    %17 = vector.broadcast %c5_i32 : i32 to vector<8x1xi32>
    %18 = arith.cmpi slt, %12, %17 : vector<8x1xi32>
    %19 = arith.andi %16, %18 : vector<8x1xi1>
    %20 = vector.extract_strided_slice %11 {offsets = [0, 0], sizes = [16, 128], strides = [1, 1]} : vector<80x128xbf16> to vector<16x128xbf16>
    %21 = vector.extract_strided_slice %11 {offsets = [16, 0], sizes = [64, 128], strides = [1, 1]} : vector<80x128xbf16> to vector<64x128xbf16>
    %cst_6 = arith.constant dense<0.000000e+00> : vector<64x16xf32>
    %22 = tpu.matmul %21, %20, %cst_6 {dimension_numbers = #tpu.dot_dimension_numbers<[1], [1], [0], [0], [0, 0, 1, 0], [], []>} : vector<64x128xbf16>, vector<16x128xbf16>, vector<64x16xf32> -> vector<64x16xf32>
    %23 = vector.extract_strided_slice %22 {offsets = [0, 0], sizes = [8, 16], strides = [1, 1]} : vector<64x16xf32> to vector<8x16xf32>
    %24 = vector.extract_strided_slice %22 {offsets = [8, 0], sizes = [8, 16], strides = [1, 1]} : vector<64x16xf32> to vector<8x16xf32>
    %25 = arith.maximumf %23, %24 : vector<8x16xf32>
    %26 = vector.extract_strided_slice %22 {offsets = [16, 0], sizes = [8, 16], strides = [1, 1]} : vector<64x16xf32> to vector<8x16xf32>
    %27 = arith.maximumf %25, %26 : vector<8x16xf32>
    %28 = vector.extract_strided_slice %22 {offsets = [24, 0], sizes = [8, 16], strides = [1, 1]} : vector<64x16xf32> to vector<8x16xf32>
    %29 = arith.maximumf %27, %28 : vector<8x16xf32>
    %30 = vector.extract_strided_slice %22 {offsets = [32, 0], sizes = [8, 16], strides = [1, 1]} : vector<64x16xf32> to vector<8x16xf32>
    %31 = arith.maximumf %29, %30 : vector<8x16xf32>
    %32 = vector.extract_strided_slice %22 {offsets = [40, 0], sizes = [8, 16], strides = [1, 1]} : vector<64x16xf32> to vector<8x16xf32>
    %33 = arith.maximumf %31, %32 : vector<8x16xf32>
    %34 = vector.extract_strided_slice %22 {offsets = [48, 0], sizes = [8, 16], strides = [1, 1]} : vector<64x16xf32> to vector<8x16xf32>
    %35 = arith.maximumf %33, %34 : vector<8x16xf32>
    %36 = vector.extract_strided_slice %22 {offsets = [56, 0], sizes = [8, 16], strides = [1, 1]} : vector<64x16xf32> to vector<8x16xf32>
    %37 = arith.maximumf %35, %36 : vector<8x16xf32>
    %cst_7 = arith.constant dense<0.000000e+00> : vector<8xf32>
    %38 = vector.multi_reduction <add>, %37, %cst_7 [1] : vector<8x16xf32> to vector<8xf32>
    %39 = vector.shape_cast %38 : vector<8xf32> to vector<8x1xf32>
    %cst_8 = arith.constant -1.000000e+30 : f32
    %40 = vector.broadcast %cst_8 : f32 to vector<8x1xf32>
    %41 = arith.select %19, %39, %40 : vector<8x1xi1>, vector<8x1xf32>
    %42 = vector.shape_cast %41 : vector<8x1xf32> to vector<1x8x1xf32>
    %cst_9 = arith.constant dense<0xFF800000> : vector<1xf32>
    %43 = vector.multi_reduction <maximumf>, %42, %cst_9 [1, 2] : vector<1x8x1xf32> to vector<1xf32>
    %44 = vector.shape_cast %43 : vector<1xf32> to vector<1x1x1xf32>
    %45 = vector.extract %44[0, 0, 0] : f32 from vector<1x1x1xf32>
    %cst_10 = arith.constant 1.000000e+00 : f32
    %46 = vector.broadcast %cst_10 : f32 to vector<8x1xf32>
    %47 = arith.subf %46, %39 : vector<8x1xf32>
    %48 = vector.broadcast %45 : f32 to vector<8x1xf32>
    %49 = arith.addf %47, %48 : vector<8x1xf32>
    %cst_11 = arith.constant 0.000000e+00 : f32
    %50 = vector.broadcast %cst_11 : f32 to vector<8x1xf32>
    %51 = arith.maximumf %50, %49 : vector<8x1xf32>
    %cst_12 = arith.constant 0.000000e+00 : f32
    %52 = vector.broadcast %cst_12 : f32 to vector<8x1xf32>
    %53 = arith.select %14, %51, %52 : vector<8x1xi1>, vector<8x1xf32>
    %54 = vector.shape_cast %53 : vector<8x1xf32> to vector<1x8x1xf32>
    %cst_13 = arith.constant dense<0.000000e+00> : vector<1xf32>
    %55 = vector.multi_reduction <add>, %54, %cst_13 [1, 2] : vector<1x8x1xf32> to vector<1xf32>
    %56 = vector.shape_cast %55 : vector<1xf32> to vector<1x1x1xf32>
    %57 = vector.extract %56[0, 0, 0] : f32 from vector<1x1x1xf32>
    %cst_14 = arith.constant 5.000000e-01 : f32
    %58 = arith.mulf %57, %cst_14 : f32
    %59 = vector.broadcast %58 : f32 to vector<1x1x128xf32>
    %c0_15 = arith.constant 0 : index
    %c0_16 = arith.constant 0 : index
    %c0_17 = arith.constant 0 : index
    %60 = vector.load %arg3[%c0_15, %c0_16, %c0_17] : memref<1x1x128xf32, #tpu.memory_space<vmem>>, vector<1x1x128xf32>
    tpu.vector_store %arg3[%c0_15, %c0_16, %c0_17], %59 {strides = array<i32>} : memref<1x1x128xf32, #tpu.memory_space<vmem>>, vector<1x1x128xf32>,
    return
  }
  func.func @transform_0(%arg0: i32) -> (i32, i32) {
    %c0_i32 = arith.constant 0 : i32
    %c0_i32_0 = arith.constant 0 : i32
    return %arg0, %c0_i32 : i32, i32
  }
  func.func @transform_1(%arg0: i32) -> (i32, i32) {
    %c0_i32 = arith.constant 0 : i32
    %c0_i32_0 = arith.constant 0 : i32
    %c0_i32_1 = arith.constant 0 : i32
    return %c0_i32, %c0_i32_0 : i32, i32
  }
  func.func @transform_2(%arg0: i32) -> (i32, i32, i32) {
    %c0_i32 = arith.constant 0 : i32
    %c0_i32_0 = arith.constant 0 : i32
    %c0_i32_1 = arith.constant 0 : i32
    return %arg0, %c0_i32, %c0_i32_0 : i32, i32, i32
  }
}

</mosaic_0001>

<bundles_post_ra>
// kernel: tpu_custom_call.1
= control target key start
LH: loop header
LB: loop body
LE: loop exit
PB: predicated region body
PF: predicated region fallthrough
CT: control target
= control target key end

     0   :  { %7 = vsyncpa [#allocation3], 0  ;;  %s997_s0 = inlined_call_operand.vmem [shape: bf16[160,64], index: 0, kind: input, shape index: {}]   ;;  %s998_s1 = inlined_call_operand.vmem [shape: bf16[64,128], index: 1, kind: input, shape index: {}]   ;;  %s999_s2 = inlined_call_operand.hbm [shape: f32[2,1,128], index: 2, kind: output, shape index: {}]  }
   0x1   :  { %9 = vsyncpa [#allocation3 + $0x1], 0  ;;  %s796_s9 = smov 0   ;;  %s798_s10 = smov 0  }
   0x2   :  { %s800_s11 = smov 0   ;;  %s802_s12 = smov 0  }
   0x3 LB: > { %s817_s13 = sadd.s32 4294967295, %s779_s12   ;;  %s592_s14 = sadd.s32 4294967294, %s779_s12   ;;  %s779_s12 = sphi %s802_s12, %s1013_s12   ;;  %s775_s11 = sphi %s800_s11, %s1012_s11   ;;  %s771_s10 = sphi %s798_s10, %s1011_s10   ;;  %s767_s9 = sphi %s796_s9, %s1010_s9  }
   0x4   : > { %s821_s15 = sadd.s32 1, %s779_s12   ;;  %s69_s16 = sadd.s32 1, %s775_s11 }
   0x5   : > { %s66_s17 = ssub.s32 %s779_s12, %s821_s15  ;;  %p79_p0 = scmp.ne.s32.totalorder %s775_s11, %s771_s10 }
   0x6   : > { %p67_p1 = scmp.eq.s32.totalorder %s66_s17, 0  ;;  %p80_p2 = scmp.eq.s32.totalorder %s817_s13, 1 }
   0x7   : > { %p85_p3 = scmp.ne.s32.totalorder %s771_s10, %s767_s9  ;;  %p86_p4 = scmp.eq.s32.totalorder %s592_s14, 1 }
   0x8   : > { %s832_s18 = scalar_select %p67_p1, %s775_s11, %s69_s16  }
   0x9   : > { %p834_p5 = por %p80_p2, %p79_p0  ;;  %p838_p6 = por %p86_p4, %p85_p3 }
   0xa   : > { %p595_p7 = scmp.ge.s32.totalorder %s779_s12, 1  ;;  %p116_p8 = scmp.lt.s32.totalorder %s779_s12, 3 }
   0xc   : > { %p117_p9 = pnand %p595_p7, %p116_p8 }
   0xd   : > { %s137_s23 = smul.u32 (!%p117_p9), 10, %s817_s13  ;;  %s135_s7 = sand.u32 (!%p117_p9), 1, %s771_s10  }
   0xe   : > { %120 = sbr.rel (%p117_p9) target bundleno = 867 (0x363), region = 28  ;;  %s533_s16 = scalar_lea.hbm (!%p117_p9), %s999_s2, %s817_s13 }
   0xf   : > { %p138_p10 = scmp.lt.s32.totalorder (!%p117_p9), %s137_s23, 19  ;;  %s136_s17 = scalar_lea.vmem (!%p117_p9), [#allocation2], %s135_s7 }
  0x10   : > { %s535_s21 = sshll.u32 (!%p117_p9), %s136_s17, 4  ;;  %s537_s22 = sshll.u32 (!%p117_p9), %s533_s16, 4  ;;  %s536_s21 = int_to_ptr.vmem [resolvable:$true] %s535_s21  ;;  %s538_s22 = int_to_ptr.hbm [resolvable:$true] %s537_s22 }
  0x11   : > { %s525_s25 = scalar_lea.sflag (!%p117_p9), [#allocation3], %s135_s7  ;;  %s731_s26 = sshra.s32 (!%p117_p9), %s538_s22, 4  ;;  %s732_s26 = int_to_ptr.hbm [resolvable:$true] %s731_s26 }
  0x12   : > { %s733_s27 = scalar_lea.hbm (!%p117_p9), %s732_s26, 1  ;;  %s737_s13 = scalar_lea.hbm (!%p117_p9), %s999_s2, 2 }
  0x13   : > { %v648_v0 = vld [vmem:[%s998_s1 + $0x18] sm:$0xff]  ;;  %v647_v1 = vld [vmem:[%s998_s1 + $0x10] sm:$0xff]  ;;  %s1015_s23 = smov (!%p138_p10, %s137_s23), 19  ;;  %v646_v2 = vld [vmem:[%s998_s1 + $0x8] sm:$0xff]  ;;  %vm211_vm0 = vcmask 523264   ;;  %p734_p11 = scmp.ne.s32.totalorder %s732_s26, %s733_s27 }
  0x14   : > { %231 = vmatpush.bf16.msra.mxu0 %v648_v0  ;;  %649 = vmatpush.bf16.msra.mxu2 %v648_v0  ;;  %s596_s28 = sshll.u32 %s1015_s23, 2  ;;  %v645_v3 = vld [vmem:[%s998_s1] sm:$0xff]  ;;  %p738_p0 = scmp.lt.s32.totalorder %s732_s26, %s999_s2 }
  0x15   : > { %s141_s5 = scalar_lea.vmem %s997_s0, %s596_s28  ;;  %p735_p12 = pnand %p734_p11, %p834_p5 }
  0x16   : > { %v640_v4 = vld [vmem:[%s141_s5] sm:$0xff]  ;;  %v642_v5 = vld [vmem:[%s141_s5 + $0x10] sm:$0xff]  ;;  %v641_v6 = vld [vmem:[%s141_s5 + $0x8] sm:$0xff]  ;;  %p739_p1 = scmp.lt.s32.totalorder %s737_s13, %s733_s27 }
  0x17   : > { %v643_v7 = vld [vmem:[%s141_s5 + $0x18] sm:$0xff]  ;;  %v644_v8 = vld [vmem:[%s141_s5 + $0x20] sm:$0xff]  ;;  %p736_p13 = pneg %p735_p12 }
  0x18   : > { %232 = vmatpush.bf16.msra.mxu0 %v647_v1  ;;  %650 = vmatpush.bf16.msra.mxu2 %v647_v1  ;;  %p740_p2 = por %p739_p1, %p738_p0 }
  0x1a   : > { %p741_p3 = pnand %p740_p2, %p736_p13 }
  0x1c   : > { %233 = vmatpush.bf16.msra.mxu0 %v646_v2  ;;  %651 = vmatpush.bf16.msra.mxu2 %v646_v2 }
  0x20   : > { %234 = vmatpush.bf16.msra.mxu0 %v645_v3  ;;  %652 = vmatpush.bf16.msra.mxu2 %v645_v3 }
  0x23   : > { %633 = vmatmul.msk.bf16.vlgmr.msra.gmra.mxu0 %vm211_vm0, %v640_v4  ;;  %635 = vmatmul.msk.bf16.vlgmr.msra.gmra.mxu2 %vm211_vm0, %v642_v5 }
  0x33   : > { %634 = vmatmul.msk.bf16.gmra.mxu0 %vm211_vm0, %v641_v6  ;;  %636 = vmatmul.msk.bf16.gmra.mxu2 %vm211_vm0, %v643_v7 }
  0x43   : > { %637 = vmatmul.msk.bf16.gmra.mxu2 %vm211_vm0, %v644_v8 }
  0xa0   : > { %v860_v9 = vpop.f32.mrf.mxu0 }
  0xa1   : > { %v261_v10 = vmul.f32 %v860_v9, %v860_v9 }
  0xa3   : > { %271 = vadd.xlane.f32.xlu0 %v261_v10 }
  0xa6   : > { %v864_v11 = vpop.f32.mrf.mxu2 }
  0xa7   : > { %v265_v12 = vmul.f32 %v864_v11, %v864_v11 }
  0xa8   : > { %v868_v13 = vpop.f32.mrf.mxu0 }
  0xa9   : > { %279 = vadd.xlane.f32.xlu1 %v265_v12  ;;  %v262_v14 = vmul.f32 %v868_v13, %v868_v13 }
  0xab   : > { %273 = vadd.xlane.f32.xlu0 %v262_v14 }
  0xae   : > { %v872_v15 = vpop.f32.mrf.mxu2 }
  0xaf   : > { %v266_v16 = vmul.f32 %v872_v15, %v872_v15 }
  0xb0   : > { %v876_v17 = vpop.f32.mrf.mxu0 }
  0xb1   : > { %281 = vadd.xlane.f32.xlu1 %v266_v16  ;;  %v263_v18 = vmul.f32 %v876_v17, %v876_v17 }
  0xb3   : > { %275 = vadd.xlane.f32.xlu0 %v263_v18 }
  0xb6   : > { %v880_v19 = vpop.f32.mrf.mxu2 }
  0xb7   : > { %v267_v20 = vmul.f32 %v880_v19, %v880_v19 }
  0xb8   : > { %v884_v21 = vpop.f32.mrf.mxu0 }
  0xb9   : > { %v264_v22 = vmul.f32 %v884_v21, %v884_v21  ;;  %283 = vadd.xlane.f32.xlu2 %v267_v20 }
  0xbb   : > { %277 = vadd.xlane.f32.xlu1 %v264_v22 }
  0xbe   : > { %v888_v23 = vpop.f32.mrf.mxu2 }
  0xbf   : > { %v268_v24 = vmul.f32 %v888_v23, %v888_v23 }
  0xc1   : > { %285 = vadd.xlane.f32.xlu2 %v268_v24 }
  0xc6   : > { %v892_v25 = vpop.f32.mrf.mxu2 }
  0xc7   : > { %v269_v26 = vmul.f32 %v892_v25, %v892_v25 }
  0xc9   : > { %287 = vadd.xlane.f32.xlu2 %v269_v26 }
  0xce   : > { %v896_v27 = vpop.f32.mrf.mxu2 }
  0xcf   : > { %v270_v28 = vmul.f32 %v896_v27, %v896_v27 }
  0xd1   : > { %289 = vadd.xlane.f32.xlu0 %v270_v28 }
 0x116   : > { %v272_v29 = vpop.xlane.xlu0 %271 }
 0x117   : > { %v291_v30 = vmax.f32 %v272_v29, 1e-24 }
 0x119   : > { %697 = vrsqrt.f32 %v291_v30  ;;  %vm307_vm2 = vweird.f32 %v291_v30 }
 0x11c   : > { %v280_v31 = vpop.xlane.xlu1 %279 }
 0x11d   : > { %v295_v32 = vmax.f32 %v280_v31, 1e-24 }
 0x11e   : > { %v274_v33 = vpop.xlane.xlu0 %273 }
 0x11f   : > { %v698_v34 = vpop.eup %697  ;;  %699 = vrsqrt.f32 %v295_v32  ;;  %v292_v35 = vmax.f32 %v274_v33, 1e-24  ;;  %vm347_vm6 = vweird.f32 %v295_v32 }
 0x120   : > { %v302_v36 = vmul.f32 %v698_v34, %v291_v30  ;;  %vm308_vm1 = vweird.f32 %v698_v34 }
 0x121   : > { %701 = vrsqrt.f32 %v292_v35  ;;  %vm903_vm3 = vmor %vm307_vm2, %vm308_vm1  ;;  %vm317_vm8 = vweird.f32 %v292_v35 }
 0x122   : > { %v303_v37 = vmul.f32 %v698_v34, %v302_v36 }
 0x124   : > { %v304_v38 = vmul.f32 0.5, %v303_v37  ;;  %v282_v39 = vpop.xlane.xlu1 %281 }
 0x125   : > { %v700_v40 = vpop.eup %699  ;;  %v296_v41 = vmax.f32 %v282_v39, 1e-24 }
 0x126   : > { %v305_v42 = vsub.f32 1.5, %v304_v38  ;;  %v342_v43 = vmul.f32 %v700_v40, %v295_v32  ;;  %v276_v44 = vpop.xlane.xlu0 %275  ;;  %vm348_vm4 = vweird.f32 %v700_v40 }
 0x127   : > { %v702_v45 = vpop.eup %701  ;;  %703 = vrsqrt.f32 %v296_v41  ;;  %v900_v46 = vmax.f32 %v276_v44, 1e-24  ;;  %vm917_vm7 = vmor %vm347_vm6, %vm348_vm4  ;;  %vm357_vm10 = vweird.f32 %v296_v41 }
 0x128   : > { %v343_v47 = vmul.f32 %v700_v40, %v342_v43  ;;  %v312_v48 = vmul.f32 %v702_v45, %v292_v35  ;;  %v306_v49 = vmul.f32 %v698_v34, %v305_v42  ;;  %vm318_vm5 = vweird.f32 %v702_v45 }
 0x129   : > { %705 = vrsqrt.f32 %v900_v46  ;;  %vm319_vm9 = vmor %vm317_vm8, %vm318_vm5  ;;  %vm327_vm12 = vweird.f32 %v900_v46 }
 0x12a   : > { %v344_v50 = vmul.f32 0.5, %v343_v47  ;;  %v313_v51 = vmul.f32 %v702_v45, %v312_v48  ;;  %v310_v56 = vsel %vm903_vm3, %v698_v34, %v306_v49 }
 0x12b   : > { %v401_v1 = vmul.f32 %v310_v56, %v860_v9 }
 0x12c   : > { %v345_v53 = vsub.f32 1.5, %v344_v50  ;;  %v314_v54 = vmul.f32 0.5, %v313_v51  ;;  %v284_v55 = vpop.xlane.xlu2 %283 }
 0x12d   : > { %v704_v57 = vpop.eup %703  ;;  %v909_v58 = vmax.f32 %v284_v55, 1e-24  ;;  %v411_v12 = vpack.c.bf16 %v401_v1, %v401_v1 }
 0x12e   : > { %v315_v59 = vsub.f32 1.5, %v314_v54  ;;  %v352_v60 = vmul.f32 %v704_v57, %v296_v41  ;;  %v278_v61 = vpop.xlane.xlu1 %277  ;;  %v346_v62 = vmul.f32 %v700_v40, %v345_v53  ;;  %vm358_vm11 = vweird.f32 %v704_v57 }
 0x12f   : > { %v911_v63 = vpop.eup %705  ;;  %707 = vrsqrt.f32 %v909_v58  ;;  %v914_v0 = vmax.f32 %v278_v61, 1e-24  ;;  %vm359_vm14 = vmor %vm357_vm10, %vm358_vm11  ;;  %v453_v31 = vunpack.c.l.b16 %v411_v12  ;;  %vm367_vm0 = vweird.f32 %v909_v58 }
 0x130   : > { %v353_v3 = vmul.f32 %v704_v57, %v352_v60  ;;  %v322_v4 = vmul.f32 %v911_v63, %v900_v46  ;;  %v316_v5 = vmul.f32 %v702_v45, %v315_v59  ;;  %v350_v9 = vsel %vm917_vm7, %v700_v40, %v346_v62 }
 0x131   : > { %709 = vrsqrt.f32 %v914_v0  ;;  %v405_v26 = vmul.f32 %v350_v9, %v864_v11  ;;  %vm328_vm13 = vweird.f32 %v911_v63  ;;  %vm337_vm2 = vweird.f32 %v914_v0 }
 0x132   : > { %v354_v6 = vmul.f32 0.5, %v353_v3  ;;  %v323_v7 = vmul.f32 %v911_v63, %v322_v4  ;;  %v320_v8 = vsel %vm319_vm9, %v702_v45, %v316_v5  ;;  %vm938_vm15 = vmor %vm327_vm12, %vm328_vm13 }
 0x133   : > { %v402_v10 = vmul.f32 %v320_v8, %v868_v13  ;;  %v415_v38 = vpack.c.bf16 %v405_v26, %v405_v26 }
 0x134   : > { %v355_v14 = vsub.f32 1.5, %v354_v6  ;;  %v324_v16 = vmul.f32 0.5, %v323_v7  ;;  %v286_v18 = vpop.xlane.xlu2 %285 }
 0x135   : > { %v708_v20 = vpop.eup %707  ;;  %v929_v22 = vmax.f32 %v286_v18, 1e-24  ;;  %v412_v24 = vpack.c.bf16 %v402_v10, %v402_v10  ;;  %v437_v48 = vunpack.c.l.b16 %v415_v38 }
 0x136   : > { %v325_v28 = vsub.f32 1.5, %v324_v16  ;;  %v362_v29 = vmul.f32 %v708_v20, %v909_v58  ;;  %v356_v13 = vmul.f32 %v704_v57, %v355_v14  ;;  %vm368_vm1 = vweird.f32 %v708_v20 }
 0x137   : > { %v710_v30 = vpop.eup %709  ;;  %711 = vrsqrt.f32 %v929_v22  ;;  %v454_v32 = vunpack.c.l.b16 %v412_v24  ;;  %vm953_vm4 = vmor %vm367_vm0, %vm368_vm1  ;;  %vm377_vm7 = vweird.f32 %v929_v22 }
 0x138   : > { %v363_v33 = vmul.f32 %v708_v20, %v362_v29  ;;  %v332_v34 = vmul.f32 %v710_v30, %v914_v0  ;;  %v360_v35 = vsel %vm359_vm14, %v704_v57, %v356_v13  ;;  %v326_v39 = vmul.f32 %v911_v63, %v325_v28 }
 0x139   : > { %v455_v36 = vpack.c.b16 %v454_v32, %v453_v31  ;;  %v406_v37 = vmul.f32 %v360_v35, %v872_v15  ;;  %vm338_vm3 = vweird.f32 %v710_v30 }
 0x13a   : > { %v364_v40 = vmul.f32 0.5, %v363_v33  ;;  %v333_v41 = vmul.f32 %v710_v30, %v332_v34  ;;  %v330_v46 = vsel %vm938_vm15, %v911_v63, %v326_v39  ;;  %vm339_vm5 = vmor %vm337_vm2, %vm338_vm3  ;;  %vm493_vm15 = vcmask 130048  }
 0x13b   : > { %464 = vmatpush.bf16.xpose.msra.mxu1 %v455_v36  ;;  %653 = vmatpush.bf16.xpose.msra.mxu3 %v455_v36  ;;  %v416_v42 = vpack.c.bf16 %v406_v37, %v406_v37  ;;  %v403_v53 = vmul.f32 %v330_v46, %v876_v17 }
 0x13c   : > { %v365_v43 = vsub.f32 1.5, %v364_v40  ;;  %v334_v44 = vmul.f32 0.5, %v333_v41  ;;  %v288_v45 = vpop.xlane.xlu2 %287 }
 0x13d   : > { %v712_v47 = vpop.eup %711  ;;  %v299_v15 = vmax.f32 %v288_v45, 1e-24  ;;  %v438_v49 = vunpack.c.l.b16 %v416_v42  ;;  %v413_v63 = vpack.c.bf16 %v403_v53, %v403_v53 }
 0x13e   : > { %v335_v50 = vsub.f32 1.5, %v334_v44  ;;  %v372_v51 = vmul.f32 %v712_v47, %v929_v22  ;;  %v366_v54 = vmul.f32 %v708_v20, %v365_v43  ;;  %vm378_vm6 = vweird.f32 %v712_v47 }
 0x13f   : > { %713 = vrsqrt.f32 %v299_v15  ;;  %v444_v52 = vpack.c.b16 %v438_v49, %v437_v48  ;;  %vm379_vm8 = vmor %vm377_vm7, %vm378_vm6  ;;  %v435_v6 = vunpack.c.l.b16 %v413_v63  ;;  %vm387_vm10 = vweird.f32 %v299_v15 }
 0x140   : > { %v373_v56 = vmul.f32 %v712_v47, %v372_v51  ;;  %v336_v57 = vmul.f32 %v710_v30, %v335_v50  ;;  %v370_v61 = vsel %vm953_vm4, %v708_v20, %v366_v54  ;;  %vm510_vm4 = vcmask 7168  }
 0x141   : > { %v407_v3 = vmul.f32 %v370_v61, %v880_v19 }
 0x142   : > { %v374_v59 = vmul.f32 0.5, %v373_v56  ;;  %470 = vmatmul.bf16.vlgmr.msra.gmra.mxu3 %v444_v52  ;;  %v340_v60 = vsel %vm339_vm5, %v710_v30, %v336_v57  ;;  %v421_v52 = vlaneseq }
 0x143   : > { %v404_v62 = vmul.f32 %v340_v60, %v884_v21  ;;  %v417_v12 = vpack.c.bf16 %v407_v3, %v407_v3 }
 0x144   : > { %v375_v17 = vsub.f32 1.5, %v374_v59  ;;  %v290_v0 = vpop.xlane.xlu0 %289  ;;  %v422_v53 = vshrl.u32 %v421_v52, 7 }
 0x145   : > { %v714_v58 = vpop.eup %713  ;;  %v300_v1 = vmax.f32 %v290_v0, 1e-24  ;;  %v414_v2 = vpack.c.bf16 %v404_v62, %v404_v62  ;;  %v439_v19 = vunpack.c.l.b16 %v417_v12 }
 0x146   : > { %v382_v4 = vmul.f32 %v714_v58, %v299_v15  ;;  %v376_v5 = vmul.f32 %v712_v47, %v375_v17  ;;  %vm388_vm9 = vweird.f32 %v714_v58  ;;  %vm424_vm0 = vcmp.ge.s32.totalorder %v422_v53, 2 }
 0x147   : > { %715 = vrsqrt.f32 %v300_v1  ;;  %v436_v7 = vunpack.c.l.b16 %v414_v2  ;;  %vm389_vm11 = vmor %vm387_vm10, %vm388_vm9  ;;  %vm397_vm13 = vweird.f32 %v300_v1  ;;  %vm425_vm1 = vcmp.lt.s32.totalorder %v422_v53, 5 }
 0x148   : > { %v383_v8 = vmul.f32 %v714_v58, %v382_v4  ;;  %v380_v9 = vsel %vm379_vm8, %v712_v47, %v376_v5  ;;  %vm426_vm2 = vmand %vm424_vm0, %vm425_vm1  ;;  %vm423_vm3 = vcmp.lt.s32.totalorder %v422_v53, 2 }
 0x149   : > { %v443_v21 = vpack.c.b16 %v436_v7, %v435_v6  ;;  %v408_v10 = vmul.f32 %v380_v9, %v888_v23 }
 0x14a   : > { %v384_v14 = vmul.f32 0.5, %v383_v8 }
 0x14b   : > { %465 = vmatmul.bf16.vlgmr.msra.gmra.mxu1 %v443_v21  ;;  %v418_v16 = vpack.c.bf16 %v408_v10, %v408_v10 }
 0x14c   : > { %v385_v18 = vsub.f32 1.5, %v384_v14 }
 0x14d   : > { %v716_v20 = vpop.eup %715  ;;  %v440_v24 = vunpack.c.l.b16 %v418_v16 }
 0x14e   : > { %v392_v22 = vmul.f32 %v716_v20, %v300_v1  ;;  %v386_v26 = vmul.f32 %v714_v58, %v385_v18  ;;  %vm398_vm12 = vweird.f32 %v716_v20 }
 0x14f   : > { %v445_v28 = vpack.c.b16 %v440_v24, %v439_v19  ;;  %vm399_vm14 = vmor %vm397_vm13, %vm398_vm12 }
 0x150   : > { %v393_v29 = vmul.f32 %v716_v20, %v392_v22  ;;  %v390_v30 = vsel %vm389_vm11, %v714_v58, %v386_v26 }
 0x151   : > { %v409_v23 = vmul.f32 %v390_v30, %v892_v25 }
 0x152   : > { %v394_v13 = vmul.f32 0.5, %v393_v29  ;;  %475 = vmatmul.bf16.gmra.mxu3 %v445_v28 }
 0x153   : > { %v419_v35 = vpack.c.bf16 %v409_v23, %v409_v23 }
 0x154   : > { %v395_v31 = vsub.f32 1.5, %v394_v13 }
 0x155   : > { %v441_v36 = vunpack.c.l.b16 %v419_v35 }
 0x156   : > { %v396_v32 = vmul.f32 %v716_v20, %v395_v31 }
 0x158   : > { %v400_v33 = vsel %vm399_vm14, %v716_v20, %v396_v32 }
 0x159   : > { %v410_v34 = vmul.f32 %v400_v33, %v896_v27 }
 0x15b   : > { %v420_v11 = vpack.c.bf16 %v410_v34, %v410_v34 }
 0x15d   : > { %v442_v37 = vunpack.c.l.b16 %v420_v11 }
 0x15f   : > { %v446_v38 = vpack.c.b16 %v442_v37, %v441_v36 }
 0x162   : > { %480 = vmatmul.bf16.gmra.mxu3 %v446_v38 }
 0x1c5   : > { %v471_v39 = vpop.f32.mrf.mxu3 }
 0x1c8   : > { %v466_v41 = vpop.f32.mrf.mxu1 }
 0x1cd   : > { %v473_v40 = vpop.f32.mrf.mxu3 }
 0x1d0   : > { %v468_v43 = vpop.f32.mrf.mxu1 }
 0x1d1   : > { %v486_v44 = vmax.f32 %v466_v41, %v468_v43 }
 0x1d3   : > { %v487_v25 = vmax.f32 %v486_v44, %v471_v39 }
 0x1d5   : > { %v476_v42 = vpop.f32.mrf.mxu3  ;;  %v488_v46 = vmax.f32 %v487_v25, %v473_v40 }
 0x1d7   : > { %v489_v15 = vmax.f32 %v488_v46, %v476_v42 }
 0x1dd   : > { %v478_v45 = vpop.f32.mrf.mxu3 }
 0x1de   : > { %v490_v48 = vmax.f32 %v489_v15, %v478_v45 }
 0x1e5   : > { %v481_v47 = vpop.f32.mrf.mxu3 }
 0x1e6   : > { %v491_v49 = vmax.f32 %v490_v48, %v481_v47 }
 0x1ed   : > { %v483_v27 = vpop.f32.mrf.mxu3 }
 0x1ee   : > { %v492_v50 = vmax.f32 %v491_v49, %v483_v27 }
 0x1f0   : > { %v494_v51 = vsel %vm493_vm15, %v492_v50, 0.0 }
 0x1f1   : > { %495 = vadd.xlane.f32.xlu1 %v494_v51 }
 0x264   : > { %v496_v54 = vpop.xlane.xlu1 %495 }
 0x265   : > { %v497_v55 = vsel %vm426_vm2, %v496_v54, -1e+30  ;;  %v505_v63 = vsub.f32 1.0, %v496_v54 }
 0x266   : > { %v498_v56 = vrot.slane %v497_v55, 4 }
 0x268   : > { %v499_v57 = vmax.f32 %v497_v55, %v498_v56 }
 0x26a   : > { %v500_v59 = vrot.slane %v499_v57, 2 }
 0x26c   : > { %v501_v60 = vmax.f32 %v499_v57, %v500_v59 }
 0x26e   : > { %v502_v61 = vrot.slane %v501_v60, 1 }
 0x270   : > { %v503_v62 = vmax.f32 %v501_v60, %v502_v61 }
 0x272   : > { %654 = vpush %v503_v62 }
 0x2a3   : > { %s655_s6 = spop %654 }
 0x2a4   : > { %v506_v17 = vstv %s655_s6 }
 0x2a5   : > { %v507_v0 = vadd.f32 %v506_v17, %v505_v63 }
 0x2a7   : > { %v508_v58 = vmax.f32 %v507_v0, 0.0 }
 0x2a9   : > { %v509_v1 = vsel %vm423_vm3, %v508_v58, 0.0 }
 0x2aa   : > { %v511_v2 = vsel %vm510_vm4, %v509_v1, 0.0 }
 0x2ab   : > { %512 = vadd.xlane.f32.xlu2 %v511_v2 }
 0x31e   : > { %v513_v3 = vpop.xlane.xlu2 %512 }
 0x31f   : > { %v514_v4 = vrot.slane %v513_v3, 4 }
 0x321   : > { %v515_v5 = vadd.f32 %v514_v4, %v513_v3 }
 0x323   : > { %v516_v6 = vrot.slane %v515_v5, 2 }
 0x325   : > { %v517_v7 = vadd.f32 %v516_v6, %v515_v5 }
 0x327   : > { %v518_v8 = vrot.slane %v517_v7, 1 }
 0x329   : > { %v519_v9 = vadd.f32 %v518_v8, %v517_v7 }
 0x32b   : > { %656 = vpush %v519_v9 }
 0x35c   : > { %s657_s23 = spop %656 }
 0x35d   : > { %s521_s24 = smul.f32 0.5, %s657_s23 }
 0x35f   : > { %v522_v21 = vstv %s521_s24 }
 0x360   : > { %523 = vst [vmem:[%s136_s17] sm:$0x1] %v522_v21 }
 0x361   : > { %744 = shalt.err (!%p741_p3)
}
 0x362   : > { %658 = dma.vmem_to_hbm [thread:$0]  (%p834_p5), %s536_s21, 16, %s538_s22, %s525_s25  }
 0x363 PF: > { %p664_p4 = scmp.ge.s32.totalorder %s779_s12, 2  ;;  %s549_s4 = sand.u32 1, %s767_s9  }
 0x364   : > { %s550_s5 = scalar_lea.sflag [#allocation3], %s549_s4 }
 0x365   : > { %p661_p7 = pnand %p664_p4, %p838_p6 }
 0x367   : > { %p662_p8 = pneg %p661_p7 }
 0x369   : > { %762 = dma.done.wait (%p662_p8), %s550_s5, 16  }
 0x36a   : > { %764 = vsyncadd (%p662_p8), %s550_s5, 4294967280  ;;  %p12_p9 = scmp.ge.s32.totalorder %s821_s15, 4   ;;  %s1010_s9 = smov %s771_s10 }
 0x36b   : > { %s1011_s10 = smov %s775_s11  ;;  %s1012_s11 = smov %s832_s18 }
 0x36c   : > { %s1013_s12 = smov %s821_s15  ;;  %14 = sbr.rel (!%p12_p9) target bundleno = 3 (0x3), region = 63 }
 0x371   :  { %555 = vsyncpa [#allocation3], 1 }
 0x372   :  { %557 = vsyncpa [#allocation3 + $0x1], 1 }

</bundles_post_ra>
